<compile_context>
chip_gen: v7x
topology: tpu7x:2x2x1
jax: 0.10.0
libtpu: 0.0.40
codegen_flags: <defaults>
</compile_context>

<pallas_src>
import functools

import jax
import jax.numpy as jnp
import numpy as np
from jax.experimental import pallas as pl
from jax.experimental.pallas import tpu as pltpu

LANE = 128  # pad the HBM-visible class dim to a full lane width (dense stores)


# ----------------------------------------------------------------------------
# Fused kernel: conv(3x3) + bias + ReLU + global-average-pool + fc, one step.
# ----------------------------------------------------------------------------
def fused_forward_kernel(xrow_ref, wmat_ref, bias_ref, pool_ref, head_ref,
                         fcb_ref, o_ref, *, H, K, B):
    """Single grid step processes the whole batch.

    xrow_ref : (B, Hp, Wp*Cin)    zero-padded image, each row lane-flattened
    wmat_ref : (K, Wp*Cin, W*Cf)  per-vertical-tap Toeplitz conv weights
    bias_ref : (1, W*Cf)          conv bias tiled over w
    pool_ref : (B, B*H)           block row-sum matrix (GAP over h)
    head_ref : (W*Cf, LANE)       GAP over (w, f) folded with fc_w / (H*W)
    fcb_ref  : (1, LANE)          fc bias padded to LANE
    o_ref    : (B, LANE)          padded logits
    """
    BH = B * H
    wp_cin = wmat_ref.shape[1]
    w_cf = wmat_ref.shape[2]

    # Conv as K MXU matmuls (one per vertical tap).  Each tap's LHS is a
    # ref-slice that dies right after its dot; the accumulator is a small
    # lane-dense (B*H, W*Cf) f32 tile.
    acc = jnp.zeros((BH, w_cf), jnp.float32)
    for kh in range(K):  # K=3, static unroll
        x_kh = xrow_ref[:, kh:kh + H, :].reshape(BH, wp_cin)
        acc = acc + jnp.dot(x_kh, wmat_ref[kh],
                            preferred_element_type=jnp.float32)

    feat = jnp.maximum(acc + bias_ref[...], 0.0)          # bias + ReLU (VPU)

    # GAP over h via a tiny matmul, then GAP over (w, f) + classifier via one
    # lane-dense matmul (fc scale 1/(H*W) folded into head on the host).
    pooled = jnp.dot(pool_ref[...], feat,
                     preferred_element_type=jnp.float32)  # (B, W*Cf)
    logits = jnp.dot(pooled, head_ref[...],
                     preferred_element_type=jnp.float32) + fcb_ref[...]
    o_ref[...] = logits                                    # (B, LANE) dense


# ----------------------------------------------------------------------------
# Wrapper
# ----------------------------------------------------------------------------
@jax.jit
def dogcat_forward(image_nchw, conv_w_hwio, conv_b, fc_w, fc_b):
    """image_nchw: (B, Cin, H, W) float32  ->  logits (B, 2) float32."""
    B, Cin, H, W = image_nchw.shape
    K = conv_w_hwio.shape[0]
    Cf = conv_w_hwio.shape[-1]
    NC = fc_w.shape[-1]
    assert K % 2 == 1, "SAME-padding math below assumes an odd kernel size"
    Hp, Wp = H + K - 1, W + K - 1

    # Host-side prep (noise at 16x16; see TODO above for production sizes):
    # NCHW -> NHWC, zero-pad spatial dims, flatten each padded row to lanes.
    x = jnp.transpose(image_nchw, (0, 2, 3, 1))
    xp = jnp.pad(x, ((0, 0), (K // 2, K // 2), (K // 2, K // 2), (0, 0)))
    xrow = xp.reshape(B, Hp, Wp * Cin)

    # Toeplitz-structured per-vertical-tap conv weights:
    #   wmat[kh, wp*Cin + c, w*Cf + f] = conv_w[kh, wp - w, c, f]  if 0<=wp-w<K
    wp_idx = jnp.arange(Wp)
    w_idx = jnp.arange(W)
    kw = wp_idx[:, None] - w_idx[None, :]                        # (Wp, W)
    valid = ((kw >= 0) & (kw < K)).astype(jnp.float32)
    wm = conv_w_hwio[:, jnp.clip(kw, 0, K - 1), :, :]            # (K,Wp,W,Cin,Cf)
    wm = wm * valid[None, :, :, None, None]
    wmat = jnp.transpose(wm, (0, 1, 3, 2, 4)).reshape(K, Wp * Cin, W * Cf)

    # Conv bias tiled over w so it adds directly onto the (B*H, W*Cf) feature.
    bias_tiled = jnp.tile(conv_b.astype(jnp.float32), (W,)).reshape(1, W * Cf)

    # GAP over h as a block row-sum matrix; GAP over (w, f) folded with the fc
    # weight (and the 1/(H*W) scale) into a lane-padded head matrix.
    pool = jnp.repeat(jnp.eye(B, dtype=jnp.float32), H, axis=1)  # (B, B*H)
    head = jnp.zeros((W * Cf, LANE), jnp.float32).at[:, :NC].set(
        jnp.tile(fc_w.astype(jnp.float32) * (1.0 / (H * W)), (W, 1)))
    fcb_pad = jnp.zeros((1, LANE), jnp.float32).at[:, :NC].set(
        fc_b.astype(jnp.float32))

    kernel = functools.partial(fused_forward_kernel, H=H, K=K, B=B)

    out = pl.pallas_call(
        kernel,
        out_shape=jax.ShapeDtypeStruct((B, LANE), jnp.float32),
        grid=(1,),  # whole (tiny) batch in one step: no per-step overhead
        in_specs=[
            pl.BlockSpec((B, Hp, Wp * Cin), lambda i: (0, 0, 0)),
            pl.BlockSpec((K, Wp * Cin, W * Cf), lambda i: (0, 0, 0)),
            pl.BlockSpec((1, W * Cf), lambda i: (0, 0)),
            pl.BlockSpec((B, B * H), lambda i: (0, 0)),
            pl.BlockSpec((W * Cf, LANE), lambda i: (0, 0)),
            pl.BlockSpec((1, LANE), lambda i: (0, 0)),
        ],
        out_specs=pl.BlockSpec((B, LANE), lambda i: (0, 0)),
        compiler_params=pltpu.CompilerParams(
            dimension_semantics=("arbitrary",)),
    )(xrow, wmat, bias_tiled, pool, head, fcb_pad)

    return out[:, :NC]


# ----------------------------------------------------------------------------
# Reference (plain JAX) for correctness check
# ----------------------------------------------------------------------------
def reference_forward(image_nchw, conv_w_hwio, conv_b, fc_w, fc_b):
    x = jnp.transpose(image_nchw, (0, 2, 3, 1))
    y = jax.lax.conv_general_dilated(
        x, conv_w_hwio, window_strides=(1, 1), padding="SAME",
        dimension_numbers=("NHWC", "HWIO", "NHWC"),
        precision=jax.lax.Precision.HIGHEST)
    y = jnp.maximum(y + conv_b, 0.0)
    pooled = jnp.mean(y, axis=(1, 2))
    return jnp.dot(pooled, fc_w, precision=jax.lax.Precision.HIGHEST) + fc_b


# ----------------------------------------------------------------------------
# Main
# ----------------------------------------------------------------------------
if __name__ == "__main__":
    B, Cin, H, W = 2, 3, 16, 16     # small RGB image batch
    K = 3                           # conv kernel size
    Cf = 32                         # backbone feature width ("fc.in_features")
    NUM_CLASSES = 2                 # dog / cat

    key = jax.random.PRNGKey(0)
    k_img, k_cw, k_cb, k_fw, k_fb = jax.random.split(key, 5)

    image = jax.random.normal(k_img, (B, Cin, H, W), dtype=jnp.float32)
    conv_w = jax.random.normal(k_cw, (K, K, Cin, Cf), dtype=jnp.float32) * 0.1
    conv_b = jax.random.normal(k_cb, (Cf,), dtype=jnp.float32) * 0.1
    fc_w = jax.random.normal(k_fw, (Cf, NUM_CLASSES), dtype=jnp.float32) * 0.1
    fc_b = jax.random.normal(k_fb, (NUM_CLASSES,), dtype=jnp.float32) * 0.1

    logits = dogcat_forward(image, conv_w, conv_b, fc_w, fc_b)
    logits = jax.block_until_ready(logits)

    ref = jax.block_until_ready(
        reference_forward(image, conv_w, conv_b, fc_w, fc_b))

    np.testing.assert_allclose(np.asarray(logits), np.asarray(ref),
                               rtol=1e-3, atol=1e-3)
    assert logits.shape == (B, NUM_CLASSES)
    print("KERNEL_OK")
</pallas_src>

<mosaic_0001>
module attributes {stable_mosaic.version = 11 : i64} {
  func.func @fused_forward_kernel(%arg0: i32, %arg1: memref<2x18x54xf32, #tpu.memory_space<vmem>>, %arg2: memref<3x54x512xf32, #tpu.memory_space<vmem>>, %arg3: memref<1x512xf32, #tpu.memory_space<vmem>>, %arg4: memref<2x32xf32, #tpu.memory_space<vmem>>, %arg5: memref<512x128xf32, #tpu.memory_space<vmem>>, %arg6: memref<1x128xf32, #tpu.memory_space<vmem>>, %arg7: memref<2x128xf32, #tpu.memory_space<vmem>>) attributes {dimension_semantics = [#tpu.dimension_semantics<arbitrary>], iteration_bounds = array<i64: 1>, scalar_prefetch = 0 : i64, scratch_operands = 0 : i64, tpu.core_type = #tpu.core_type<tc>, window_params = [{pipeline_mode = #tpu.pipeline_mode<synchronous>, transform_indices = @transform_0, window_bounds = array<i64: 2, 18, 54>}, {pipeline_mode = #tpu.pipeline_mode<synchronous>, transform_indices = @transform_1, window_bounds = array<i64: 3, 54, 512>}, {pipeline_mode = #tpu.pipeline_mode<synchronous>, transform_indices = @transform_2, window_bounds = array<i64: 1, 512>}, {pipeline_mode = #tpu.pipeline_mode<synchronous>, transform_indices = @transform_3, window_bounds = array<i64: 2, 32>}, {pipeline_mode = #tpu.pipeline_mode<synchronous>, transform_indices = @transform_4, window_bounds = array<i64: 512, 128>}, {pipeline_mode = #tpu.pipeline_mode<synchronous>, transform_indices = @transform_5, window_bounds = array<i64: 1, 128>}, {pipeline_mode = #tpu.pipeline_mode<synchronous>, transform_indices = @transform_6, window_bounds = array<i64: 2, 128>}]} {
    %cst = arith.constant 0.000000e+00 : f32
    %0 = vector.broadcast %cst : f32 to vector<32x512xf32>
    %c0 = arith.constant 0 : index
    %c0_0 = arith.constant 0 : index
    %c0_1 = arith.constant 0 : index
    %1 = vector.load %arg1[%c0, %c0_0, %c0_1] : memref<2x18x54xf32, #tpu.memory_space<vmem>>, vector<2x16x54xf32>
    %2 = vector.shape_cast %1 : vector<2x16x54xf32> to vector<32x54xf32>
    %c0_2 = arith.constant 0 : index
    %c0_3 = arith.constant 0 : index
    %c0_4 = arith.constant 0 : index
    %3 = vector.load %arg2[%c0_2, %c0_3, %c0_4] : memref<3x54x512xf32, #tpu.memory_space<vmem>>, vector<1x54x512xf32>
    %4 = vector.shape_cast %3 : vector<1x54x512xf32> to vector<54x512xf32>
    %cst_5 = arith.constant dense<0.000000e+00> : vector<32x512xf32>
    %5 = tpu.matmul %2, %4, %cst_5 {dimension_numbers = #tpu.dot_dimension_numbers<[1], [0], [0], [1], [0, 0, 1, 1], [], []>} : vector<32x54xf32>, vector<54x512xf32>, vector<32x512xf32> -> vector<32x512xf32>
    %6 = arith.addf %0, %5 : vector<32x512xf32>
    %c0_6 = arith.constant 0 : index
    %c1 = arith.constant 1 : index
    %c0_7 = arith.constant 0 : index
    %7 = vector.load %arg1[%c0_6, %c1, %c0_7] : memref<2x18x54xf32, #tpu.memory_space<vmem>>, vector<2x16x54xf32>
    %8 = vector.shape_cast %7 : vector<2x16x54xf32> to vector<32x54xf32>
    %c1_8 = arith.constant 1 : index
    %c0_9 = arith.constant 0 : index
    %c0_10 = arith.constant 0 : index
    %9 = vector.load %arg2[%c1_8, %c0_9, %c0_10] : memref<3x54x512xf32, #tpu.memory_space<vmem>>, vector<1x54x512xf32>
    %10 = vector.shape_cast %9 : vector<1x54x512xf32> to vector<54x512xf32>
    %cst_11 = arith.constant dense<0.000000e+00> : vector<32x512xf32>
    %11 = tpu.matmul %8, %10, %cst_11 {dimension_numbers = #tpu.dot_dimension_numbers<[1], [0], [0], [1], [0, 0, 1, 1], [], []>} : vector<32x54xf32>, vector<54x512xf32>, vector<32x512xf32> -> vector<32x512xf32>
    %12 = arith.addf %6, %11 : vector<32x512xf32>
    %c0_12 = arith.constant 0 : index
    %c2 = arith.constant 2 : index
    %c0_13 = arith.constant 0 : index
    %13 = vector.load %arg1[%c0_12, %c2, %c0_13] : memref<2x18x54xf32, #tpu.memory_space<vmem>>, vector<2x16x54xf32>
    %14 = vector.shape_cast %13 : vector<2x16x54xf32> to vector<32x54xf32>
    %c2_14 = arith.constant 2 : index
    %c0_15 = arith.constant 0 : index
    %c0_16 = arith.constant 0 : index
    %15 = vector.load %arg2[%c2_14, %c0_15, %c0_16] : memref<3x54x512xf32, #tpu.memory_space<vmem>>, vector<1x54x512xf32>
    %16 = vector.shape_cast %15 : vector<1x54x512xf32> to vector<54x512xf32>
    %cst_17 = arith.constant dense<0.000000e+00> : vector<32x512xf32>
    %17 = tpu.matmul %14, %16, %cst_17 {dimension_numbers = #tpu.dot_dimension_numbers<[1], [0], [0], [1], [0, 0, 1, 1], [], []>} : vector<32x54xf32>, vector<54x512xf32>, vector<32x512xf32> -> vector<32x512xf32>
    %18 = arith.addf %12, %17 : vector<32x512xf32>
    %c0_18 = arith.constant 0 : index
    %c0_19 = arith.constant 0 : index
    %19 = vector.load %arg3[%c0_18, %c0_19] : memref<1x512xf32, #tpu.memory_space<vmem>>, vector<1x512xf32>
    %20 = vector.broadcast %19 : vector<1x512xf32> to vector<32x512xf32>
    %21 = arith.addf %18, %20 : vector<32x512xf32>
    %cst_20 = arith.constant 0.000000e+00 : f32
    %22 = vector.broadcast %cst_20 : f32 to vector<32x512xf32>
    %23 = arith.maximumf %21, %22 : vector<32x512xf32>
    %c0_21 = arith.constant 0 : index
    %c0_22 = arith.constant 0 : index
    %24 = vector.load %arg4[%c0_21, %c0_22] : memref<2x32xf32, #tpu.memory_space<vmem>>, vector<2x32xf32>
    %cst_23 = arith.constant dense<0.000000e+00> : vector<2x512xf32>
    %25 = tpu.matmul %24, %23, %cst_23 {dimension_numbers = #tpu.dot_dimension_numbers<[1], [0], [0], [1], [0, 0, 1, 1], [], []>} : vector<2x32xf32>, vector<32x512xf32>, vector<2x512xf32> -> vector<2x512xf32>
    %c0_24 = arith.constant 0 : index
    %c0_25 = arith.constant 0 : index
    %26 = vector.load %arg5[%c0_24, %c0_25] : memref<512x128xf32, #tpu.memory_space<vmem>>, vector<512x128xf32>
    %cst_26 = arith.constant dense<0.000000e+00> : vector<2x128xf32>
    %27 = tpu.matmul %25, %26, %cst_26 {dimension_numbers = #tpu.dot_dimension_numbers<[1], [0], [0], [1], [0, 0, 1, 1], [], []>} : vector<2x512xf32>, vector<512x128xf32>, vector<2x128xf32> -> vector<2x128xf32>
    %c0_27 = arith.constant 0 : index
    %c0_28 = arith.constant 0 : index
    %28 = vector.load %arg6[%c0_27, %c0_28] : memref<1x128xf32, #tpu.memory_space<vmem>>, vector<1x128xf32>
    %29 = vector.broadcast %28 : vector<1x128xf32> to vector<2x128xf32>
    %30 = arith.addf %27, %29 : vector<2x128xf32>
    %c0_29 = arith.constant 0 : index
    %c0_30 = arith.constant 0 : index
    %31 = vector.load %arg7[%c0_29, %c0_30] : memref<2x128xf32, #tpu.memory_space<vmem>>, vector<2x128xf32>
    tpu.vector_store %arg7[%c0_29, %c0_30], %30 {strides = array<i32>} : memref<2x128xf32, #tpu.memory_space<vmem>>, vector<2x128xf32>,
    return
  }
  func.func @transform_0(%arg0: i32) -> (i32, i32, i32) {
    %c0_i32 = arith.constant 0 : i32
    %c0_i32_0 = arith.constant 0 : i32
    %c0_i32_1 = arith.constant 0 : i32
    %c0_i32_2 = arith.constant 0 : i32
    return %c0_i32, %c0_i32_0, %c0_i32_1 : i32, i32, i32
  }
  func.func @transform_1(%arg0: i32) -> (i32, i32, i32) {
    %c0_i32 = arith.constant 0 : i32
    %c0_i32_0 = arith.constant 0 : i32
    %c0_i32_1 = arith.constant 0 : i32
    %c0_i32_2 = arith.constant 0 : i32
    return %c0_i32, %c0_i32_0, %c0_i32_1 : i32, i32, i32
  }
  func.func @transform_2(%arg0: i32) -> (i32, i32) {
    %c0_i32 = arith.constant 0 : i32
    %c0_i32_0 = arith.constant 0 : i32
    %c0_i32_1 = arith.constant 0 : i32
    return %c0_i32, %c0_i32_0 : i32, i32
  }
  func.func @transform_3(%arg0: i32) -> (i32, i32) {
    %c0_i32 = arith.constant 0 : i32
    %c0_i32_0 = arith.constant 0 : i32
    %c0_i32_1 = arith.constant 0 : i32
    return %c0_i32, %c0_i32_0 : i32, i32
  }
  func.func @transform_4(%arg0: i32) -> (i32, i32) {
    %c0_i32 = arith.constant 0 : i32
    %c0_i32_0 = arith.constant 0 : i32
    %c0_i32_1 = arith.constant 0 : i32
    return %c0_i32, %c0_i32_0 : i32, i32
  }
  func.func @transform_5(%arg0: i32) -> (i32, i32) {
    %c0_i32 = arith.constant 0 : i32
    %c0_i32_0 = arith.constant 0 : i32
    %c0_i32_1 = arith.constant 0 : i32
    return %c0_i32, %c0_i32_0 : i32, i32
  }
  func.func @transform_6(%arg0: i32) -> (i32, i32) {
    %c0_i32 = arith.constant 0 : i32
    %c0_i32_0 = arith.constant 0 : i32
    %c0_i32_1 = arith.constant 0 : i32
    return %c0_i32, %c0_i32_0 : i32, i32
  }
}

</mosaic_0001>

<bundles_post_ra>
// kernel: tile.13
= control target key start
LH: loop header
LB: loop body
LE: loop exit
PB: predicated region body
PF: predicated region fallthrough
CT: control target
= control target key end

     0   :  { %s28_s0 = inlined_call_operand.vmem [shape: f32[32], index: 0, kind: input, shape index: {}]   ;;  %s29_s1 = inlined_call_operand.vmem [shape: f32[16,32], index: 1, kind: output, shape index: {}]  }
   0x1   :  { %v4_v0 = vld [vmem:[%s28_s0] ss:$0 sm:$0xff] }
   0x2   :  { %5 = vst [vmem:[%s29_s1] sm:$0xff] %v4_v0  ;;  %8 = vst [vmem:[%s29_s1 + $0x8] sm:$0xff] %v4_v0 }

// kernel: tile.14
= control target key start
LH: loop header
LB: loop body
LE: loop exit
PB: predicated region body
PF: predicated region fallthrough
CT: control target
= control target key end

     0   :  { %s57_s8 = smov 96   ;;  %vm3_vm0 = vcmask 261120   ;;  %s59_s15 = smov 64   ;;  %vm9_vm1 = vcmask 1048320   ;;  %vm15_vm2 = vcmask 785920   ;;  %vm21_vm3 = vcmask 523520   ;;  %s94_s0 = inlined_call_operand.vmem [shape: f32[16,32], index: 0, kind: input, shape index: {}]   ;;  %s95_s1 = inlined_call_operand.vmem [shape: f32[1,512], index: 1, kind: output, shape index: {}]  }
   0x1   :  { %v48_v0 = vld [vmem:[%s94_s0 + $0x3] ss:$4 sm:$0xf]   ;;  %v49_v1 = vld [vmem:[%s94_s0 + $0x2] ss:$4 sm:$0xf]  }
   0x2   :  { %7 = vrot.lane.b32.xlu0 %v48_v0, %s57_s8  ;;  %v50_v2 = vld [vmem:[%s94_s0 + $0x1] ss:$4 sm:$0xf]   ;;  %v2_v3 = vld [vmem:[%s94_s0] ss:$4 sm:$0xf]  }
   0x3   :  { %s58_s0 = smov 32   ;;  %4 = vst.msk [vmem:[#allocation0] ss:$8 sm:$0xf] %vm3_vm0, %v2_v3  }
   0x4   :  { %19 = vrot.lane.b32.xlu1 %v50_v2, %s58_s0 }
   0x6   :  { %13 = vrot.lane.b32.xlu0 %v49_v1, %s59_s15 }
  0x74   :  { %v8_v4 = vpop.permute.xlu0 %7  }
  0x75   :  { %10 = vst.msk [vmem:[#allocation0] ss:$8 sm:$0xf] %vm9_vm1, %v8_v4  }
  0x76   :  { %v20_v5 = vpop.permute.xlu1 %19  }
  0x78   :  { %v14_v6 = vpop.permute.xlu0 %13  }
  0x79   :  { %16 = vst.msk [vmem:[#allocation0] ss:$8 sm:$0xf] %vm15_vm2, %v14_v6  }
  0x7a   :  { %22 = vst.msk [vmem:[#allocation0] ss:$8 sm:$0xf] %vm21_vm3, %v20_v5  }
  0x81   :  { %v26_v7 = vld [vmem:[#allocation0] sm:$0x1]  ;;  %v30_v8 = vld [vmem:[#allocation0 + $0x8] sm:$0x1]  ;;  %v35_v9 = vld [vmem:[#allocation0 + $0x10] sm:$0x1] }
  0x82   :  { %28 = vst [vmem:[%s95_s1] sm:$0x1] %v26_v7  ;;  %51 = vst [vmem:[%s95_s1 + $0x1] sm:$0x1] %v30_v8  ;;  %v41_v10 = vld [vmem:[#allocation0 + $0x18] sm:$0x1] }
  0x83   :  { %52 = vst [vmem:[%s95_s1 + $0x2] sm:$0x1] %v35_v9  ;;  %53 = vst [vmem:[%s95_s1 + $0x3] sm:$0x1] %v41_v10 }

// kernel: dogcat_forward.1
= control target key start
LH: loop header
LB: loop body
LE: loop exit
PB: predicated region body
PF: predicated region fallthrough
CT: control target
= control target key end

     0   :  { %v1548_v7 = vmov 0.0   ;;  %vm102_vm0 = vcmask 1045504   ;;  %vm89_vm1 = vcmask 441344   ;;  %s2150_s0 = inlined_call_operand.vmem [shape: f32[2,18,54], index: 0, kind: input, shape index: {}]   ;;  %s2151_s1 = inlined_call_operand.vmem [shape: f32[3,54,512], index: 1, kind: input, shape index: {}]   ;;  %s2152_s2 = inlined_call_operand.vmem [shape: f32[1,512], index: 2, kind: input, shape index: {}]   ;;  %s2153_s3 = inlined_call_operand.vmem [shape: f32[2,32], index: 3, kind: input, shape index: {}]   ;;  %s2154_s4 = inlined_call_operand.vmem [shape: f32[512,128], index: 4, kind: input, shape index: {}]   ;;  %s2155_s5 = inlined_call_operand.vmem [shape: f32[1,128], index: 5, kind: input, shape index: {}]   ;;  %s2156_s6 = inlined_call_operand.hbm [shape: f32[2,128], index: 6, kind: output, shape index: {}]  }
   0x1   :  { %v1174_v0 = vld [vmem:[%s2151_s1 + $0xe8] sm:$0xff]  ;;  %v1176_v2 = vld [vmem:[%s2151_s1 + $0xf8] sm:$0xff]  ;;  %v1173_v5 = vld [vmem:[%s2151_s1 + $0xe0] sm:$0xff]  ;;  %179 = vmatprep.mubr.f32.mxu0 %v1548_v7  ;;  %268 = vmatprep.mubr.f32.mxu1 %v1548_v7 }
   0x2   :  { %v1178_v1 = vld [vmem:[%s2151_s1 + $0x108] sm:$0xff]  ;;  %v1180_v4 = vld [vmem:[%s2151_s1 + $0x118] sm:$0xff]  ;;  %v1177_v6 = vld [vmem:[%s2151_s1 + $0x100] sm:$0xff] }
   0x3   :  { %v1338_v3 = vpack.c.bf16 %v1178_v1, %v1174_v0  ;;  %v1350_v8 = vpack.c.bf16 %v1180_v4, %v1176_v2  ;;  %v1340_v9 = vpack.c.bf16 %v1177_v6, %v1173_v5  ;;  %v1175_v10 = vld [vmem:[%s2151_s1 + $0xf0] sm:$0xff]  ;;  %v1182_v12 = vld [vmem:[%s2151_s1 + $0x128] sm:$0xff]  ;;  %v1184_v15 = vld [vmem:[%s2151_s1 + $0x138] sm:$0xff] }
   0x4   :  { %v1179_v11 = vld [vmem:[%s2151_s1 + $0x110] sm:$0xff]  ;;  %v1186_v14 = vld [vmem:[%s2151_s1 + $0x148] sm:$0xff]  ;;  %v1188_v16 = vld [vmem:[%s2151_s1 + $0x158] sm:$0xff] }
   0x5   :  { %1339 = vmatprep.subr.bf16.mxu0 %v1338_v3  ;;  %v1352_v13 = vpack.c.bf16 %v1179_v11, %v1175_v10  ;;  %1351 = vmatprep.subr.bf16.mxu1 %v1350_v8  ;;  %v1342_v17 = vpack.c.bf16 %v1186_v14, %v1182_v12  ;;  %v1354_v18 = vpack.c.bf16 %v1188_v16, %v1184_v15  ;;  %v1181_v19 = vld [vmem:[%s2151_s1 + $0x120] sm:$0xff]  ;;  %v1183_v21 = vld [vmem:[%s2151_s1 + $0x130] sm:$0xff]  ;;  %v1190_v24 = vld [vmem:[%s2151_s1 + $0x168] sm:$0xff] }
   0x6   :  { %1341 = vmatpush1.bf16.msra.mxu0 %v1340_v9  ;;  %v1185_v20 = vld [vmem:[%s2151_s1 + $0x140] sm:$0xff]  ;;  %v1187_v23 = vld [vmem:[%s2151_s1 + $0x150] sm:$0xff]  ;;  %v1194_v25 = vld [vmem:[%s2151_s1 + $0x188] sm:$0xff] }
   0x7   :  { %1353 = vmatpush1.bf16.msra.mxu1 %v1352_v13  ;;  %v1344_v22 = vpack.c.bf16 %v1185_v20, %v1181_v19  ;;  %1343 = vmatprep.subr.bf16.mxu0 %v1342_v17  ;;  %v1356_v26 = vpack.c.bf16 %v1187_v23, %v1183_v21  ;;  %v1346_v27 = vpack.c.bf16 %v1194_v25, %v1190_v24  ;;  %v1192_v28 = vld [vmem:[%s2151_s1 + $0x178] sm:$0xff]  ;;  %v1189_v30 = vld [vmem:[%s2151_s1 + $0x160] sm:$0xff]  ;;  %v1191_v33 = vld [vmem:[%s2151_s1 + $0x170] sm:$0xff] }
   0x8   :  { %1355 = vmatprep.subr.bf16.mxu1 %v1354_v18  ;;  %v1196_v29 = vld [vmem:[%s2151_s1 + $0x198] sm:$0xff]  ;;  %v1193_v32 = vld [vmem:[%s2151_s1 + $0x180] sm:$0xff]  ;;  %v1195_v34 = vld [vmem:[%s2151_s1 + $0x190] sm:$0xff] }
   0x9   :  { %v1358_v31 = vpack.c.bf16 %v1196_v29, %v1192_v28  ;;  %v1348_v35 = vpack.c.bf16 %v1193_v32, %v1189_v30  ;;  %v1360_v36 = vpack.c.bf16 %v1195_v34, %v1191_v33  ;;  %v1198_v37 = vld [vmem:[%s2151_s1 + $0x1a8] sm:$0x3f]  ;;  %v1200_v38 = vld [vmem:[%s2151_s1 + $0x1b8] sm:$0x3f]  ;;  %v1197_v41 = vld [vmem:[%s2151_s1 + $0x1a0] sm:$0x3f] }
   0xa   :  { %1345 = vmatpush1.bf16.msra.mxu0 %v1344_v22  ;;  %v29_v39 = vld [vmem:[%s2151_s1 + $0x8] sm:$0xff]  ;;  %v31_v42 = vld [vmem:[%s2151_s1 + $0x18] sm:$0xff]  ;;  %v1199_v44 = vld [vmem:[%s2151_s1 + $0x1b0] sm:$0x3f] }
   0xb   :  { %1357 = vmatpush1.bf16.msra.mxu1 %v1356_v26  ;;  %1347 = vmatprep.subr.bf16.mxu0 %v1346_v27  ;;  %v33_v40 = vld [vmem:[%s2151_s1 + $0x28] sm:$0xff]  ;;  %v35_v43 = vld [vmem:[%s2151_s1 + $0x38] sm:$0xff]  ;;  %v28_v45 = vld [vmem:[%s2151_s1] sm:$0xff] }
   0xc   :  { %1359 = vmatprep.subr.bf16.mxu1 %v1358_v31  ;;  %v32_v46 = vld [vmem:[%s2151_s1 + $0x20] sm:$0xff]  ;;  %v1362_v48 = vpack.c.bf16 %v33_v40, %v29_v39  ;;  %v30_v49 = vld [vmem:[%s2151_s1 + $0x10] sm:$0xff]  ;;  %v1374_v51 = vpack.c.bf16 %v35_v43, %v31_v42  ;;  %v37_v52 = vld [vmem:[%s2151_s1 + $0x48] sm:$0xff] }
   0xd   :  { %v56_v47 = vld [vmem:[%s2150_s0 + $0x1] sm:$0xff]  ;;  %v34_v50 = vld [vmem:[%s2151_s1 + $0x30] sm:$0xff]  ;;  %v1364_v54 = vpack.c.bf16 %v32_v46, %v28_v45  ;;  %v39_v55 = vld [vmem:[%s2151_s1 + $0x58] sm:$0xff] }
   0xe   :  { %1349 = vmatpush1.bf16.msra.mxu0 %v1348_v35  ;;  %v41_v53 = vld [vmem:[%s2151_s1 + $0x68] sm:$0xff]  ;;  %v43_v56 = vld [vmem:[%s2151_s1 + $0x78] sm:$0xff]  ;;  %v1376_v57 = vpack.c.bf16 %v34_v50, %v30_v49  ;;  %v36_v58 = vld [vmem:[%s2151_s1 + $0x40] sm:$0xff] }
   0xf   :  { %1361 = vmatpush1.bf16.msra.mxu1 %v1360_v36  ;;  %1201 = vmatprep.subr.msk.mxu0 %vm102_vm0, %v1198_v37  ;;  %v40_v59 = vld [vmem:[%s2151_s1 + $0x60] sm:$0xff]  ;;  %v57_v60 = vld [vmem:[%s2150_s0 + $0x9] sm:$0xff]  ;;  %v1366_v61 = vpack.c.bf16 %v41_v53, %v37_v52  ;;  %v1378_v0 = vpack.c.bf16 %v43_v56, %v39_v55  ;;  %v47_v4 = vld [vmem:[%s2151_s1 + $0x98] sm:$0xff] }
  0x10   :  { %1207 = vmatprep.subr.msk.mxu1 %vm102_vm0, %v1200_v38  ;;  %v38_v62 = vld [vmem:[%s2151_s1 + $0x50] sm:$0xff]  ;;  %v45_v1 = vld [vmem:[%s2151_s1 + $0x88] sm:$0xff]  ;;  %v1368_v3 = vpack.c.bf16 %v40_v59, %v36_v58  ;;  %v51_v5 = vld [vmem:[%s2151_s1 + $0xb8] sm:$0xff] }
  0x11   :  { %v42_v63 = vld [vmem:[%s2151_s1 + $0x70] sm:$0xff]  ;;  %v49_v2 = vld [vmem:[%s2151_s1 + $0xa8] sm:$0xff]  ;;  %v44_v8 = vld [vmem:[%s2151_s1 + $0x80] sm:$0xff]  ;;  %v1382_v14 = vpack.c.bf16 %v51_v5, %v47_v4 }
  0x12   :  { %1202 = vmatpush1.msk.msra.mxu0 %vm102_vm0, %v1197_v41  ;;  %v1380_v6 = vpack.c.bf16 %v42_v63, %v38_v62  ;;  %v48_v9 = vld [vmem:[%s2151_s1 + $0xa0] sm:$0xff]  ;;  %v1370_v11 = vpack.c.bf16 %v49_v2, %v45_v1  ;;  %v46_v12 = vld [vmem:[%s2151_s1 + $0x90] sm:$0xff]  ;;  %v53_v18 = vld [vmem:[%s2151_s1 + $0xc8] sm:$0x3f] }
  0x13   :  { %1208 = vmatpush1.msk.msra.mxu1 %vm102_vm0, %v1199_v44  ;;  %1203 = vmatmul.mubr.msk.f32.vlgmr.msra.gmra.mrb[0].mxu0 %vm89_vm1, %v56_v47  ;;  %v58_v10 = vld [vmem:[%s2150_s0 + $0x19] sm:$0xff]  ;;  %v50_v13 = vld [vmem:[%s2151_s1 + $0xb0] sm:$0xff]  ;;  %v1372_v15 = vpack.c.bf16 %v48_v9, %v44_v8  ;;  %v59_v17 = vld [vmem:[%s2150_s0 + $0x21] sm:$0xff] }
  0x14   :  { %1209 = vmatmul.mubr.msk.f32.vlgmr.msra.gmra.mrb[0].mxu1 %vm89_vm1, %v56_v47  ;;  %1363 = vmatprep.subr.bf16.mxu0 %v1362_v48  ;;  %v1384_v16 = vpack.c.bf16 %v50_v13, %v46_v12  ;;  %v55_v19 = vld [vmem:[%s2151_s1 + $0xd8] sm:$0x3f]  ;;  %v1226_v20 = vld [vmem:[%s2151_s1 + $0x1c8] sm:$0xff]  ;;  %v52_v22 = vld [vmem:[%s2151_s1 + $0xc0] sm:$0x3f] }
  0x15   :  { %1375 = vmatprep.subr.bf16.mxu1 %v1374_v51  ;;  %185 = vmatprep.mubr.f32.mxu0 %v1548_v7  ;;  %v1230_v21 = vld [vmem:[%s2151_s1 + $0x1e8] sm:$0xff]  ;;  %v1228_v23 = vld [vmem:[%s2151_s1 + $0x1d8] sm:$0xff]  ;;  %v54_v25 = vld [vmem:[%s2151_s1 + $0xd0] sm:$0x3f] }
  0x16   :  { %274 = vmatprep.mubr.f32.mxu1 %v1548_v7  ;;  %1365 = vmatpush1.bf16.msra.mxu0 %v1364_v54  ;;  %v1232_v24 = vld [vmem:[%s2151_s1 + $0x1f8] sm:$0xff]  ;;  %v1225_v26 = vld [vmem:[%s2151_s1 + $0x1c0] sm:$0xff]  ;;  %v1386_v29 = vpack.c.bf16 %v1230_v21, %v1226_v20  ;;  %v1227_v30 = vld [vmem:[%s2151_s1 + $0x1d0] sm:$0xff] }
  0x17   :  { %1377 = vmatpush1.bf16.msra.mxu1 %v1376_v57  ;;  %1204 = vmatmul.mubr.msk.f32.gmra.mrb[2].mxu0 %vm89_vm1, %v57_v60  ;;  %v1229_v27 = vld [vmem:[%s2151_s1 + $0x1e0] sm:$0xff]  ;;  %v1231_v31 = vld [vmem:[%s2151_s1 + $0x1f0] sm:$0xff]  ;;  %v1398_v32 = vpack.c.bf16 %v1232_v24, %v1228_v23  ;;  %v1234_v33 = vld [vmem:[%s2151_s1 + $0x208] sm:$0xff] }
  0x18   :  { %1210 = vmatmul.mubr.msk.f32.gmra.mrb[2].mxu1 %vm89_vm1, %v57_v60  ;;  %1367 = vmatprep.subr.bf16.mxu0 %v1366_v61  ;;  %v24_v28 = vld [vmem:[%s2150_s0] sm:$0xff]  ;;  %v1238_v34 = vld [vmem:[%s2151_s1 + $0x228] sm:$0xff]  ;;  %v1388_v35 = vpack.c.bf16 %v1229_v27, %v1225_v26  ;;  %v1236_v36 = vld [vmem:[%s2151_s1 + $0x218] sm:$0xff] }
  0x19   :  { %1379 = vmatprep.subr.bf16.mxu1 %v1378_v0  ;;  %191 = vmatprep.mubr.f32.mxu0 %v1548_v7  ;;  %v1240_v37 = vld [vmem:[%s2151_s1 + $0x238] sm:$0xff] }
  0x1a   :  { %280 = vmatprep.mubr.f32.mxu1 %v1548_v7  ;;  %1369 = vmatpush1.bf16.msra.mxu0 %v1368_v3 }
  0x1b   :  { %1381 = vmatpush1.bf16.msra.mxu1 %v1380_v6  ;;  %1205 = vmatmul.mubr.msk.f32.gmra.mrb[4].mxu0 %vm89_vm1, %v58_v10 }
  0x1c   :  { %1211 = vmatmul.mubr.msk.f32.gmra.mrb[4].mxu1 %vm89_vm1, %v58_v10  ;;  %1371 = vmatprep.subr.bf16.mxu0 %v1370_v11 }
  0x1d   :  { %1383 = vmatprep.subr.bf16.mxu1 %v1382_v14  ;;  %197 = vmatprep.mubr.f32.mxu0 %v1548_v7 }
  0x1e   :  { %286 = vmatprep.mubr.f32.mxu1 %v1548_v7  ;;  %1373 = vmatpush1.bf16.msra.mxu0 %v1372_v15 }
  0x1f   :  { %1385 = vmatpush1.bf16.msra.mxu1 %v1384_v16  ;;  %1206 = vmatmul.mubr.msk.f32.gmra.mrb[6].mxu0 %vm89_vm1, %v59_v17 }
  0x20   :  { %1212 = vmatmul.mubr.msk.f32.gmra.mrb[6].mxu1 %vm89_vm1, %v59_v17  ;;  %1213 = vmatprep.subr.msk.mxu0 %vm102_vm0, %v53_v18 }
  0x21   :  { %1219 = vmatprep.subr.msk.mxu1 %vm102_vm0, %v55_v19  ;;  %381 = vmatprep.mubr.f32.mxu0 %v1548_v7 }
  0x22   :  { %1214 = vmatpush1.msk.msra.mxu0 %vm102_vm0, %v52_v22  ;;  %470 = vmatprep.mubr.f32.mxu1 %v1548_v7 }
  0x23   :  { %11 = vsyncpa [#allocation3], 0  ;;  %1220 = vmatpush1.msk.msra.mxu1 %vm102_vm0, %v54_v25  ;;  %1215 = vmatmul.mubr.msk.f32.vlgmr.msra.gmra.mrb[0].mxu0 %vm89_vm1, %v24_v28  ;;  %v1400_v38 = vpack.c.bf16 %v1231_v31, %v1227_v30  ;;  %v1233_v39 = vld [vmem:[%s2151_s1 + $0x200] sm:$0xff]  ;;  %v25_v41 = vld [vmem:[%s2150_s0 + $0x8] sm:$0xff]  ;;  %v1390_v42 = vpack.c.bf16 %v1238_v34, %v1234_v33  ;;  %v1402_v45 = vpack.c.bf16 %v1240_v37, %v1236_v36  ;;  %v748_v6 = vlaneseq }
  0x24   :  { %v1237_v40 = vld [vmem:[%s2151_s1 + $0x220] sm:$0xff]  ;;  %1221 = vmatmul.mubr.msk.f32.vlgmr.msra.gmra.mrb[0].mxu1 %vm89_vm1, %v24_v28  ;;  %1387 = vmatprep.subr.bf16.mxu0 %v1386_v29  ;;  %v1235_v43 = vld [vmem:[%s2151_s1 + $0x210] sm:$0xff]  ;;  %v1242_v46 = vld [vmem:[%s2151_s1 + $0x248] sm:$0xff]  ;;  %vm801_vm2 = vcmask 261120  }
  0x25   :  { %v1239_v44 = vld [vmem:[%s2151_s1 + $0x230] sm:$0xff]  ;;  %1399 = vmatprep.subr.bf16.mxu1 %v1398_v32  ;;  %387 = vmatprep.mubr.f32.mxu0 %v1548_v7  ;;  %v1246_v47 = vld [vmem:[%s2151_s1 + $0x268] sm:$0xff]  ;;  %v1392_v48 = vpack.c.bf16 %v1237_v40, %v1233_v39  ;;  %v1244_v49 = vld [vmem:[%s2151_s1 + $0x258] sm:$0xff]  ;;  %v749_v8 = vshrl.u32 %v748_v6, 7 }
  0x26   :  { %476 = vmatprep.mubr.f32.mxu1 %v1548_v7  ;;  %1389 = vmatpush1.bf16.msra.mxu0 %v1388_v35  ;;  %v1248_v50 = vld [vmem:[%s2151_s1 + $0x278] sm:$0xff]  ;;  %v1404_v51 = vpack.c.bf16 %v1239_v44, %v1235_v43  ;;  %v1241_v52 = vld [vmem:[%s2151_s1 + $0x240] sm:$0xff]  ;;  %v1394_v55 = vpack.c.bf16 %v1246_v47, %v1242_v46  ;;  %v1243_v56 = vld [vmem:[%s2151_s1 + $0x250] sm:$0xff] }
  0x27   :  { %1401 = vmatpush1.bf16.msra.mxu1 %v1400_v38  ;;  %1216 = vmatmul.mubr.msk.f32.gmra.mrb[2].mxu0 %vm89_vm1, %v25_v41  ;;  %v1245_v53 = vld [vmem:[%s2151_s1 + $0x260] sm:$0xff]  ;;  %v26_v54 = vld [vmem:[%s2150_s0 + $0x18] sm:$0xff]  ;;  %v1247_v57 = vld [vmem:[%s2151_s1 + $0x270] sm:$0xff]  ;;  %v1406_v58 = vpack.c.bf16 %v1248_v50, %v1244_v49  ;;  %v750_v9 = vsub.s32 0, %v749_v8  ;;  %v758_v11 = vsub.s32 2, %v749_v8  ;;  %v754_v12 = vsub.s32 1, %v749_v8 }
  0x28   :  { %1222 = vmatmul.mubr.msk.f32.gmra.mrb[2].mxu1 %vm89_vm1, %v25_v41  ;;  %1391 = vmatprep.subr.bf16.mxu0 %v1390_v42  ;;  %v1396_v59 = vpack.c.bf16 %v1245_v53, %v1241_v52  ;;  %v1408_v60 = vpack.c.bf16 %v1247_v57, %v1243_v56  ;;  %v27_v61 = vld [vmem:[%s2150_s0 + $0x20] sm:$0xff]  ;;  %v1250_v62 = vld [vmem:[%s2151_s1 + $0x288] sm:$0x3f]  ;;  %v1252_v63 = vld [vmem:[%s2151_s1 + $0x298] sm:$0x3f]  ;;  %v762_v13 = vsub.s32 3, %v749_v8 }
  0x29   :  { %1403 = vmatprep.subr.bf16.mxu1 %v1402_v45  ;;  %393 = vmatprep.mubr.f32.mxu0 %v1548_v7  ;;  %v1249_v0 = vld [vmem:[%s2151_s1 + $0x280] sm:$0x3f]  ;;  %v1251_v1 = vld [vmem:[%s2151_s1 + $0x290] sm:$0x3f]  ;;  %v996_v6 = vld [vmem:[%s2154_s4 + $0x188] sm:$0xff] }
  0x2a   :  { %482 = vmatprep.mubr.f32.mxu1 %v1548_v7  ;;  %1393 = vmatpush1.bf16.msra.mxu0 %v1392_v48  ;;  %v495_v2 = vld [vmem:[%s2150_s0 + $0x2] sm:$0xff]  ;;  %v496_v3 = vld [vmem:[%s2150_s0 + $0xa] sm:$0xff]  ;;  %v497_v4 = vld [vmem:[%s2150_s0 + $0x1a] sm:$0xff] }
  0x2b   :  { %1405 = vmatpush1.bf16.msra.mxu1 %v1404_v51  ;;  %1217 = vmatmul.mubr.msk.f32.gmra.mrb[4].mxu0 %vm89_vm1, %v26_v54  ;;  %v498_v5 = vld [vmem:[%s2150_s0 + $0x22] sm:$0xff] }
  0x2c   :  { %1223 = vmatmul.mubr.msk.f32.gmra.mrb[4].mxu1 %vm89_vm1, %v26_v54  ;;  %1395 = vmatprep.subr.bf16.mxu0 %v1394_v55  ;;  %v746_v10 = vld [vmem:[%s2152_s2] sm:$0xf] }
  0x2d   :  { %1407 = vmatprep.subr.bf16.mxu1 %v1406_v58  ;;  %399 = vmatprep.mubr.f32.mxu0 %v1548_v7  ;;  %v751_v14 = vrot.slane %v746_v10, %v750_v9  ;;  %v759_v16 = vrot.slane %v746_v10, %v758_v11  ;;  %v755_v17 = vrot.slane %v746_v10, %v754_v12 }
  0x2e   :  { %488 = vmatprep.mubr.f32.mxu1 %v1548_v7  ;;  %1397 = vmatpush1.bf16.msra.mxu0 %v1396_v59  ;;  %v763_v20 = vrot.slane %v746_v10, %v762_v13 }
  0x2f   :  { %1409 = vmatpush1.bf16.msra.mxu1 %v1408_v60  ;;  %1218 = vmatmul.mubr.msk.f32.gmra.mrb[6].mxu0 %vm89_vm1, %v27_v61 }
  0x30   :  { %1224 = vmatmul.mubr.msk.f32.gmra.mrb[6].mxu1 %vm89_vm1, %v27_v61  ;;  %1253 = vmatprep.subr.msk.mxu0 %vm102_vm0, %v1250_v62 }
  0x31   :  { %1259 = vmatprep.subr.msk.mxu1 %vm102_vm0, %v1252_v63  ;;  %616 = vmatprep.mubr.f32.mxu0 %v1548_v7  ;;  %v963_v63 = vld [vmem:[%s2154_s4 + $0x80] sm:$0xff] }
  0x32   :  { %1254 = vmatpush1.msk.msra.mxu0 %vm102_vm0, %v1249_v0  ;;  %705 = vmatprep.mubr.f32.mxu1 %v1548_v7  ;;  %v964_v0 = vld [vmem:[%s2154_s4 + $0x88] sm:$0xff] }
  0x33   :  { %1260 = vmatpush1.msk.msra.mxu1 %vm102_vm0, %v1251_v1  ;;  %1255 = vmatmul.mubr.msk.f32.vlgmr.msra.gmra.mrb[0].mxu0 %vm89_vm1, %v495_v2  ;;  %v1426_v13 = vpack.c.bf16 %v964_v0, %v963_v63  ;;  %v955_v63 = vld [vmem:[%s2154_s4 + $0x40] sm:$0xff]  ;;  %v956_v0 = vld [vmem:[%s2154_s4 + $0x48] sm:$0xff] }
  0x34   :  { %1261 = vmatmul.mubr.msk.f32.vlgmr.msra.gmra.mrb[0].mxu1 %vm89_vm1, %v495_v2  ;;  %622 = vmatprep.mubr.f32.mxu0 %v1548_v7 }
  0x35   :  { %711 = vmatprep.mubr.f32.mxu1 %v1548_v7 }
  0x37   :  { %1256 = vmatmul.mubr.msk.f32.gmra.mrb[2].mxu0 %vm89_vm1, %v496_v3 }
  0x38   :  { %1262 = vmatmul.mubr.msk.f32.gmra.mrb[2].mxu1 %vm89_vm1, %v496_v3  ;;  %628 = vmatprep.mubr.f32.mxu0 %v1548_v7 }
  0x39   :  { %717 = vmatprep.mubr.f32.mxu1 %v1548_v7 }
  0x3b   :  { %1257 = vmatmul.mubr.msk.f32.gmra.mrb[4].mxu0 %vm89_vm1, %v497_v4 }
  0x3c   :  { %1263 = vmatmul.mubr.msk.f32.gmra.mrb[4].mxu1 %vm89_vm1, %v497_v4  ;;  %634 = vmatprep.mubr.f32.mxu0 %v1548_v7 }
  0x3d   :  { %723 = vmatprep.mubr.f32.mxu1 %v1548_v7 }
  0x3f   :  { %1258 = vmatmul.mubr.msk.f32.gmra.mrb[6].mxu0 %vm89_vm1, %v498_v5 }
  0x40   :  { %1264 = vmatmul.mubr.msk.f32.gmra.mrb[6].mxu1 %vm89_vm1, %v498_v5  ;;  %869 = vmatprep.mubr.f32.mxu0 %v1548_v7  ;;  %v995_v5 = vld [vmem:[%s2154_s4 + $0x180] sm:$0xff] }
  0x41   :  { %940 = vmatprep.mubr.f32.mxu1 %v1548_v7 }
 0x106   :  { %v618_v15 = vpop.f32.mrb[0].mxu0 }
 0x107   :  { %v707_v18 = vpop.f32.mrb[0].mxu1  ;;  %v620_v19 = vpop.f32.mrb[1].mxu0  ;;  %v768_v22 = vadd.f32 %v751_v14, %v618_v15  ;;  %v948_v15 = vld [vmem:[%s2154_s4 + $0x8] sm:$0xff] }
 0x108   :  { %v709_v21 = vpop.f32.mrb[1].mxu1  ;;  %v770_v7 = vadd.f32 %v759_v16, %v707_v18  ;;  %v769_v23 = vadd.f32 %v755_v17, %v620_v19  ;;  %v1458_v18 = vpack.c.bf16 %v996_v6, %v995_v5  ;;  %v980_v19 = vld [vmem:[%s2154_s4 + $0x108] sm:$0xff]  ;;  %v974_v5 = vld [vmem:[%s2154_s4 + $0xd8] sm:$0xff]  ;;  %v1005_v6 = vld [vmem:[%s2154_s4 + $0x1d0] sm:$0xff] }
 0x109   :  { %v771_v25 = vadd.f32 %v763_v20, %v709_v21  ;;  %v784_v32 = vmax.f32 %v768_v22, 0.0  ;;  %v966_v21 = vld [vmem:[%s2154_s4 + $0x98] sm:$0xff]  ;;  %v997_v22 = vld [vmem:[%s2154_s4 + $0x190] sm:$0xff] }
 0x10a   :  { %v624_v24 = vpop.f32.mrb[2].mxu0  ;;  %v786_v35 = vmax.f32 %v770_v7, 0.0  ;;  %v785_v36 = vmax.f32 %v769_v23, 0.0  ;;  %v998_v7 = vld [vmem:[%s2154_s4 + $0x198] sm:$0xff]  ;;  %v800_v23 = vld [vmem:[%s2153_s3] sm:$0x3] }
 0x10b   :  { %v772_v26 = vadd.f32 %v751_v14, %v624_v24  ;;  %v713_v27 = vpop.f32.mrb[2].mxu1  ;;  %v626_v28 = vpop.f32.mrb[3].mxu0  ;;  %v787_v40 = vmax.f32 %v771_v25, 0.0 }
 0x10c   :  { %v774_v29 = vadd.f32 %v759_v16, %v713_v27  ;;  %v773_v30 = vadd.f32 %v755_v17, %v626_v28  ;;  %v715_v31 = vpop.f32.mrb[3].mxu1  ;;  %v949_v27 = vld [vmem:[%s2154_s4 + $0x10] sm:$0xff]  ;;  %v950_v28 = vld [vmem:[%s2154_s4 + $0x18] sm:$0xff] }
 0x10d   :  { %v788_v33 = vmax.f32 %v772_v26, 0.0  ;;  %v775_v34 = vadd.f32 %v763_v20, %v715_v31  ;;  %v982_v31 = vld [vmem:[%s2154_s4 + $0x118] sm:$0xff] }
 0x10e   :  { %v790_v37 = vmax.f32 %v774_v29, 0.0  ;;  %v789_v38 = vmax.f32 %v773_v30, 0.0  ;;  %v630_v39 = vpop.f32.mrb[4].mxu0  ;;  %v981_v29 = vld [vmem:[%s2154_s4 + $0x110] sm:$0xff]  ;;  %v1462_v30 = vpack.c.bf16 %v998_v7, %v997_v22 }
 0x10f   :  { %v1412_v41 = vpack.c.bf16 %v788_v33, %v784_v32  ;;  %v791_v42 = vmax.f32 %v775_v34, 0.0  ;;  %v719_v43 = vpop.f32.mrb[4].mxu1  ;;  %v632_v44 = vpop.f32.mrb[5].mxu0  ;;  %v776_v49 = vadd.f32 %v751_v14, %v630_v39  ;;  %v967_v32 = vld [vmem:[%s2154_s4 + $0xa0] sm:$0xff]  ;;  %v968_v33 = vld [vmem:[%s2154_s4 + $0xa8] sm:$0xff] }
 0x110   :  { %v1420_v45 = vpack.c.bf16 %v790_v37, %v786_v35  ;;  %v1410_v46 = vpack.c.bf16 %v789_v38, %v785_v36  ;;  %v721_v47 = vpop.f32.mrb[5].mxu1  ;;  %v778_v50 = vadd.f32 %v759_v16, %v719_v43  ;;  %v777_v51 = vadd.f32 %v755_v17, %v632_v44  ;;  %v999_v34 = vld [vmem:[%s2154_s4 + $0x1a0] sm:$0xff]  ;;  %v1000_v35 = vld [vmem:[%s2154_s4 + $0x1a8] sm:$0xff]  ;;  %v969_v44 = vld [vmem:[%s2154_s4 + $0xb0] sm:$0xff] }
 0x111   :  { %v1418_v48 = vpack.c.bf16 %v791_v42, %v787_v40  ;;  %v779_v53 = vadd.f32 %v763_v20, %v721_v47  ;;  %v792_v60 = vmax.f32 %v776_v49, 0.0  ;;  %v1432_v36 = vpack.c.bf16 %v950_v28, %v949_v27  ;;  %v951_v39 = vld [vmem:[%s2154_s4 + $0x20] sm:$0xff]  ;;  %v952_v40 = vld [vmem:[%s2154_s4 + $0x28] sm:$0xff]  ;;  %v1002_v47 = vld [vmem:[%s2154_s4 + $0x1b8] sm:$0xff] }
 0x112   :  { %v636_v52 = vpop.f32.mrb[6].mxu0  ;;  %1411 = vmatprep.subr.bf16.mxu0 %v1410_v46  ;;  %v794_v1 = vmax.f32 %v778_v50, 0.0  ;;  %v793_v2 = vmax.f32 %v777_v51, 0.0  ;;  %v1464_v37 = vpack.c.bf16 %v982_v31, %v981_v29  ;;  %v1434_v38 = vpack.c.bf16 %v968_v33, %v967_v32  ;;  %v984_v43 = vld [vmem:[%s2154_s4 + $0x128] sm:$0xff]  ;;  %v1001_v46 = vld [vmem:[%s2154_s4 + $0x1b0] sm:$0xff]  ;;  %v978_v29 = vld [vmem:[%s2154_s4 + $0xf8] sm:$0xff] }
 0x113   :  { %v780_v54 = vadd.f32 %v751_v14, %v636_v52  ;;  %v725_v55 = vpop.f32.mrb[6].mxu1  ;;  %1419 = vmatprep.subr.bf16.mxu1 %v1418_v48  ;;  %v638_v56 = vpop.f32.mrb[7].mxu0  ;;  %1413 = vmatpush1.bf16.msra.mxu0 %v1412_v41  ;;  %v795_v8 = vmax.f32 %v779_v53, 0.0  ;;  %v947_v14 = vld [vmem:[%s2154_s4] sm:$0xff]  ;;  %v1466_v42 = vpack.c.bf16 %v1000_v35, %v999_v34  ;;  %v1436_v48 = vpack.c.bf16 %v952_v40, %v951_v39  ;;  %v953_v51 = vld [vmem:[%s2154_s4 + $0x30] sm:$0xff]  ;;  %v954_v52 = vld [vmem:[%s2154_s4 + $0x38] sm:$0xff] }
 0x114   :  { %v782_v57 = vadd.f32 %v759_v16, %v725_v55  ;;  %v781_v58 = vadd.f32 %v755_v17, %v638_v56  ;;  %v727_v59 = vpop.f32.mrb[7].mxu1  ;;  %1421 = vmatpush1.bf16.msra.mxu1 %v1420_v45  ;;  %v979_v16 = vld [vmem:[%s2154_s4 + $0x100] sm:$0xff]  ;;  %v1428_v24 = vpack.c.bf16 %v948_v15, %v947_v14  ;;  %v970_v45 = vld [vmem:[%s2154_s4 + $0xb8] sm:$0xff]  ;;  %v985_v53 = vld [vmem:[%s2154_s4 + $0x130] sm:$0xff] }
 0x115   :  { %v796_v61 = vmax.f32 %v780_v54, 0.0  ;;  %v783_v62 = vadd.f32 %v763_v20, %v727_v59  ;;  %v965_v20 = vld [vmem:[%s2154_s4 + $0x90] sm:$0xff]  ;;  %v1460_v25 = vpack.c.bf16 %v980_v19, %v979_v16  ;;  %v983_v41 = vld [vmem:[%s2154_s4 + $0x120] sm:$0xff]  ;;  %v1438_v50 = vpack.c.bf16 %v970_v45, %v969_v44  ;;  %v986_v55 = vld [vmem:[%s2154_s4 + $0x138] sm:$0xff] }
 0x116   :  { %v798_v3 = vmax.f32 %v782_v57, 0.0  ;;  %v797_v4 = vmax.f32 %v781_v58, 0.0  ;;  %v1430_v26 = vpack.c.bf16 %v966_v21, %v965_v20  ;;  %v1468_v49 = vpack.c.bf16 %v984_v43, %v983_v41  ;;  %v971_v56 = vld [vmem:[%s2154_s4 + $0xc0] sm:$0xff]  ;;  %v972_v57 = vld [vmem:[%s2154_s4 + $0xc8] sm:$0xff]  ;;  %v989_v14 = vld [vmem:[%s2154_s4 + $0x150] sm:$0xff] }
 0x117   :  { %v1416_v9 = vpack.c.bf16 %v796_v61, %v792_v60  ;;  %v799_v10 = vmax.f32 %v783_v62, 0.0  ;;  %v1470_v54 = vpack.c.bf16 %v1002_v47, %v1001_v46  ;;  %v1003_v58 = vld [vmem:[%s2154_s4 + $0x1c0] sm:$0xff]  ;;  %v1004_v59 = vld [vmem:[%s2154_s4 + $0x1c8] sm:$0xff]  ;;  %v1440_v60 = vpack.c.bf16 %v954_v52, %v953_v51  ;;  %v990_v16 = vld [vmem:[%s2154_s4 + $0x158] sm:$0xff] }
 0x118   :  { %v1424_v11 = vpack.c.bf16 %v798_v3, %v794_v1  ;;  %v1414_v12 = vpack.c.bf16 %v797_v4, %v793_v2  ;;  %v1472_v61 = vpack.c.bf16 %v986_v55, %v985_v53  ;;  %v1442_v62 = vpack.c.bf16 %v972_v57, %v971_v56  ;;  %v987_v1 = vld [vmem:[%s2154_s4 + $0x140] sm:$0xff]  ;;  %v988_v3 = vld [vmem:[%s2154_s4 + $0x148] sm:$0xff]  ;;  %v973_v4 = vld [vmem:[%s2154_s4 + $0xd0] sm:$0xff] }
 0x119   :  { %v1422_v17 = vpack.c.bf16 %v799_v10, %v795_v8  ;;  %v1474_v2 = vpack.c.bf16 %v1004_v59, %v1003_v58  ;;  %v1006_v8 = vld [vmem:[%s2154_s4 + $0x1d8] sm:$0xff]  ;;  %v1476_v10 = vpack.c.bf16 %v988_v3, %v987_v1  ;;  %v1007_v19 = vld [vmem:[%s2154_s4 + $0x1e0] sm:$0xff]  ;;  %v1008_v20 = vld [vmem:[%s2154_s4 + $0x1e8] sm:$0xff]  ;;  %v1480_v22 = vpack.c.bf16 %v990_v16, %v989_v14 }
 0x11a   :  { %1415 = vmatprep.subr.bf16.mxu0 %v1414_v12  ;;  %v957_v12 = vld [vmem:[%s2154_s4 + $0x50] sm:$0xff]  ;;  %v1478_v15 = vpack.c.bf16 %v1006_v8, %v1005_v6  ;;  %v992_v27 = vld [vmem:[%s2154_s4 + $0x168] sm:$0xff]  ;;  %v1010_v34 = vld [vmem:[%s2154_s4 + $0x1f8] sm:$0xff] }
 0x11b   :  { %1423 = vmatprep.subr.bf16.mxu1 %v1422_v17  ;;  %1417 = vmatpush1.bf16.msra.mxu0 %v1416_v9  ;;  %v1444_v9 = vpack.c.bf16 %v956_v0, %v955_v63  ;;  %v975_v17 = vld [vmem:[%s2154_s4 + $0xe0] sm:$0xff]  ;;  %v977_v28 = vld [vmem:[%s2154_s4 + $0xf0] sm:$0xff]  ;;  %v994_v40 = vld [vmem:[%s2154_s4 + $0x178] sm:$0xff] }
 0x11c   :  { %1425 = vmatpush1.bf16.msra.mxu1 %v1424_v11  ;;  %1427 = vmatprep.subr.bf16.mxu0 %v1426_v13  ;;  %v1446_v11 = vpack.c.bf16 %v974_v5, %v973_v4  ;;  %v958_v13 = vld [vmem:[%s2154_s4 + $0x58] sm:$0xff]  ;;  %v1454_v32 = vpack.c.bf16 %v978_v29, %v977_v28  ;;  %v1009_v33 = vld [vmem:[%s2154_s4 + $0x1f0] sm:$0xff]  ;;  %v1267_v47 = vld [vmem:[%s2155_s5] ss:$0 sm:$0xff] }
 0x11d   :  { %1459 = vmatprep.subr.bf16.mxu1 %v1458_v18  ;;  %v976_v18 = vld [vmem:[%s2154_s4 + $0xe8] sm:$0xff]  ;;  %v1448_v21 = vpack.c.bf16 %v958_v13, %v957_v12  ;;  %v961_v35 = vld [vmem:[%s2154_s4 + $0x70] sm:$0xff] }
 0x11e   :  { %1265 = vmatmul.mubr.msk.f32.vlgmr.msra.gmra.mrb[8].mxu0 %vm801_vm2, %v800_v23  ;;  %v1450_v7 = vpack.c.bf16 %v976_v18, %v975_v17 }
 0x11f   :  { %1266 = vmatmul.mubr.msk.f32.vlgmr.msra.gmra.mrb[8].mxu1 %vm801_vm2, %v800_v23  ;;  %1429 = vmatpush3.bf16.msra.mxu0 %v1428_v24  ;;  %v959_v23 = vld [vmem:[%s2154_s4 + $0x60] sm:$0xff]  ;;  %v960_v24 = vld [vmem:[%s2154_s4 + $0x68] sm:$0xff] }
 0x120   :  { %1461 = vmatpush3.bf16.msra.mxu1 %v1460_v25  ;;  %1431 = vmatprep.subr.bf16.mxu0 %v1430_v26  ;;  %v991_v25 = vld [vmem:[%s2154_s4 + $0x160] sm:$0xff]  ;;  %v1482_v26 = vpack.c.bf16 %v1008_v20, %v1007_v19 }
 0x121   :  { %1463 = vmatprep.subr.bf16.mxu1 %v1462_v30  ;;  %v1452_v30 = vpack.c.bf16 %v960_v24, %v959_v23  ;;  %v1484_v31 = vpack.c.bf16 %v992_v27, %v991_v25 }
 0x123   :  { %1433 = vmatpush3.bf16.msra.mxu0 %v1432_v36  ;;  %v962_v36 = vld [vmem:[%s2154_s4 + $0x78] sm:$0xff] }
 0x124   :  { %1465 = vmatpush3.bf16.msra.mxu1 %v1464_v37  ;;  %1435 = vmatprep.subr.bf16.mxu0 %v1434_v38  ;;  %v1486_v37 = vpack.c.bf16 %v1010_v34, %v1009_v33  ;;  %v993_v38 = vld [vmem:[%s2154_s4 + $0x170] sm:$0xff]  ;;  %v1456_v39 = vpack.c.bf16 %v962_v36, %v961_v35  ;;  %s1549_s4 = smov [#allocation2]  }
 0x125   :  { %1467 = vmatprep.subr.bf16.mxu1 %v1466_v42  ;;  %v1488_v41 = vpack.c.bf16 %v994_v40, %v993_v38  ;;  %s1165_s15 = sshll.u32 %s1549_s4, 4  ;;  %s1166_s15 = int_to_ptr.vmem [resolvable:$true] %s1165_s15 }
 0x126   :  { %s1524_s16 = scalar_lea.vmem %s1166_s15, 32  ;;  %p1529_p1 = scmp.lt.s32.totalorder %s1166_s15, %s1166_s15 }
 0x127   :  { %1437 = vmatpush3.bf16.msra.mxu0 %v1436_v48  ;;  %p1525_p0 = scmp.ne.s32.totalorder %s1166_s15, %s1524_s16  ;;  %p1530_p2 = scmp.lt.s32.totalorder %s1524_s16, %s1524_s16 }
 0x128   :  { %1469 = vmatpush3.bf16.msra.mxu1 %v1468_v49  ;;  %1439 = vmatprep.subr.bf16.mxu0 %v1438_v50 }
 0x129   :  { %1471 = vmatprep.subr.bf16.mxu1 %v1470_v54  ;;  %p1531_p3 = por %p1530_p2, %p1529_p1 }
 0x12b   :  { %1441 = vmatpush3.bf16.msra.mxu0 %v1440_v60  ;;  %p1532_p4 = pnand %p1531_p3, %p1525_p0 }
 0x12c   :  { %1473 = vmatpush3.bf16.msra.mxu1 %v1472_v61  ;;  %1443 = vmatprep.subr.bf16.mxu0 %v1442_v62 }
 0x12d   :  { %1475 = vmatprep.subr.bf16.mxu1 %v1474_v2 }
 0x12f   :  { %1445 = vmatpush3.bf16.msra.mxu0 %v1444_v9 }
 0x130   :  { %1477 = vmatpush3.bf16.msra.mxu1 %v1476_v10  ;;  %1447 = vmatprep.subr.bf16.mxu0 %v1446_v11 }
 0x131   :  { %1479 = vmatprep.subr.bf16.mxu1 %v1478_v15 }
 0x133   :  { %1449 = vmatpush3.bf16.msra.mxu0 %v1448_v21 }
 0x134   :  { %1481 = vmatpush3.bf16.msra.mxu1 %v1480_v22  ;;  %1451 = vmatprep.subr.bf16.mxu0 %v1450_v7 }
 0x135   :  { %1483 = vmatprep.subr.bf16.mxu1 %v1482_v26 }
 0x137   :  { %1453 = vmatpush3.bf16.msra.mxu0 %v1452_v30 }
 0x138   :  { %1485 = vmatpush3.bf16.msra.mxu1 %v1484_v31  ;;  %1455 = vmatprep.subr.bf16.mxu0 %v1454_v32 }
 0x139   :  { %1487 = vmatprep.subr.bf16.mxu1 %v1486_v37 }
 0x13b   :  { %1457 = vmatpush3.bf16.msra.mxu0 %v1456_v39 }
 0x13c   :  { %1489 = vmatpush3.bf16.msra.mxu1 %v1488_v41 }
 0x1f1   :  { %v871_v42 = vpop.f32.mrb[8].mxu0 }
 0x1f2   :  { %v873_v43 = vpop.f32.mrb[9].mxu0  ;;  %v942_v44 = vpop.f32.mrb[8].mxu1 }
 0x1f3   :  { %1082 = vmatprep.mubr.f32.mxu0 %v873_v43  ;;  %v944_v45 = vpop.f32.mrb[9].mxu1 }
 0x1f4   :  { %1083 = vmatmul.mubr.f32.vlgmr.msra.gmra.mrb[10].mxu0 %v871_v42  ;;  %1152 = vmatprep.mubr.f32.mxu1 %v944_v45 }
 0x1f5   :  { %1153 = vmatmul.mubr.f32.vlgmr.msra.gmra.mrb[10].mxu1 %v942_v44 }
 0x2c7   :  { %v1300_v46 = vpop.f32.mrb[10].mxu0 }
 0x2c8   :  { %v1301_v48 = vpop.f32.mrb[11].mxu0  ;;  %v1335_v49 = vpop.f32.mrb[10].mxu1 }
 0x2c9   :  { %v1302_v50 = vadd.f32 %v1301_v48, %v1300_v46  ;;  %v1336_v51 = vpop.f32.mrb[11].mxu1 }
 0x2ca   :  { %v1337_v52 = vadd.f32 %v1336_v51, %v1335_v49 }
 0x2cb   :  { %v1085_v53 = vadd.f32 %v1302_v50, %v1267_v47 }
 0x2cd   :  { %v1155_v54 = vadd.f32 %v1337_v52, %v1085_v53 }
 0x2cf   :  { %1158 = vst [vmem:[#allocation2] sm:$0x3] %v1155_v54 }
 0x2d0   :  { %1535 = shalt.err (!%p1532_p4)
}
 0x2d1   :  { %s1536_s18 = scalar_lea.hbm %s2156_s6, 32 }
 0x2d2   :  { %p1537_p5 = scmp.ne.s32.totalorder %s2156_s6, %s1536_s18  ;;  %p1540_p6 = scmp.lt.u32.totalorder %s1536_s18, %s2156_s6 }
 0x2d4   :  { %p1542_p7 = pnand %p1540_p6, %p1537_p5 }
 0x2d6   :  { %1545 = shalt.err (!%p1542_p7)
}
 0x2d7   :  { %1168 = dma.vmem_to_hbm [thread:$0]  %s1166_s15, 32, %s2156_s6, [#allocation3]  }
 0x2d8   :  { %1546 = dma.done.wait [#allocation3], 32  }
 0x2d9   :  { %1547 = vsyncadd [#allocation3], 4294967264 }
 0x2da   :  { %1172 = vsyncpa [#allocation3], 1 }

</bundles_post_ra>
